<compile_context>
chip_gen: v5e
topology: v5e:2x2
jax: 0.10.0
libtpu: 0.0.40
codegen_flags: <defaults>
</compile_context>

<pallas_src>
import jax
import jax.numpy as jnp
from jax.experimental import pallas as pl
from jax.experimental.pallas import tpu as pltpu

IN_DIM = 20 * 20   # 400
HID_DIM = 25
OUT_DIM = 10

# Lane-dense padded dims for the (VMEM-resident) weights and the output.
HID_PAD = 128
OUT_PAD = 128

MAX_TB = 2048      # batch-tile cap; ~8 MiB/step of VMEM at this size


def _round_up(n, m):
    return ((n + m - 1) // m) * m


def _cdiv(a, b):
    return (a + b - 1) // b


def _choose_tb(batch):
    """Batch tile size: multiple of 16, capped at MAX_TB, >=2 tiles once the
    batch is big enough to matter (so v7x's two TensorCores both get work),
    and sized ~batch/n_tiles so row-padding waste stays small."""
    min_tiles = 2 if batch >= 64 else 1
    n_tiles = max(min_tiles, _cdiv(batch, MAX_TB))
    return min(MAX_TB, _round_up(_cdiv(batch, n_tiles), 16))


def _mlp_kernel(x_ref, w1_ref, b1_ref, w2_ref, b2_ref, o_ref):
    # Fused: bf16 cast (VPU) -> matmul (MXU, f32 acc) -> bias+sigmoid (VPU/EUP)
    #        -> matmul (MXU) -> bias+sigmoid -> bf16 store.
    x = x_ref[...].astype(jnp.bfloat16)                               # (TB, 400)
    h = jnp.dot(x, w1_ref[...], preferred_element_type=jnp.float32)   # (TB, 128) f32
    h = jax.nn.sigmoid(h + b1_ref[...])
    y = jnp.dot(h.astype(jnp.bfloat16), w2_ref[...],
                preferred_element_type=jnp.float32)                   # (TB, 128) f32
    o_ref[...] = jax.nn.sigmoid(y + b2_ref[...]).astype(o_ref.dtype)  # bf16 store


def prepare_params(w1, b1, w2, b2):
    """One-time parameter prep: pad to lane-dense shapes, cast matmul operands
    to bf16.  w1: (400, 25); b1: (1, 25); w2: (25, 10); b2: (1, 10)."""
    w1p = jnp.zeros((IN_DIM, HID_PAD), jnp.bfloat16)
    w1p = w1p.at[:, :HID_DIM].set(w1.astype(jnp.bfloat16))
    b1p = jnp.zeros((1, HID_PAD), jnp.float32).at[:, :HID_DIM].set(b1)
    w2p = jnp.zeros((HID_PAD, OUT_PAD), jnp.bfloat16)
    w2p = w2p.at[:HID_DIM, :OUT_DIM].set(w2.astype(jnp.bfloat16))
    b2p = jnp.zeros((1, OUT_PAD), jnp.float32).at[:, :OUT_DIM].set(b2)
    return w1p, b1p, w2p, b2p


def net_forward(x, params):
    """x: (batch, 400) f32; params: output of prepare_params(). Returns (batch, 10) f32."""
    w1p, b1p, w2p, b2p = params
    batch = x.shape[0]
    tb = _choose_tb(batch)
    padded_batch = _round_up(batch, tb)

    x = x.astype(jnp.float32)
    if padded_batch != batch:
        # Only row-padding (<= ~16 rows/tile); padded rows are sliced off below.
        xp = jnp.zeros((padded_batch, IN_DIM), jnp.float32).at[:batch].set(x)
    else:
        xp = x

    grid = (padded_batch // tb,)
    out = pl.pallas_call(
        _mlp_kernel,
        out_shape=jax.ShapeDtypeStruct((padded_batch, OUT_PAD), jnp.bfloat16),
        grid_spec=pltpu.PrefetchScalarGridSpec(
            num_scalar_prefetch=0,
            grid=grid,
            in_specs=[
                # Streamed x tile: last dim == full array dim (400), so the
                # (8,128) rule is satisfied; cast to bf16 happens in-kernel.
                pl.BlockSpec((tb, IN_DIM), lambda i: (i, 0)),
                # Weights/biases: VMEM-resident across the whole grid.
                pl.BlockSpec((IN_DIM, HID_PAD), lambda i: (0, 0)),
                pl.BlockSpec((1, HID_PAD), lambda i: (0, 0)),
                pl.BlockSpec((HID_PAD, OUT_PAD), lambda i: (0, 0)),
                pl.BlockSpec((1, OUT_PAD), lambda i: (0, 0)),
            ],
            out_specs=pl.BlockSpec((tb, OUT_PAD), lambda i: (i, 0)),  # lane-dense bf16 store
        ),
        compiler_params=pltpu.CompilerParams(
            dimension_semantics=("parallel",)),                       # 2-TC shard on v7x
    )(xp, w1p, b1p, w2p, b2p)
    return out[:batch, :OUT_DIM].astype(jnp.float32)


def reference_forward_f32(x, w1, b1, w2, b2):
    h = jax.nn.sigmoid(x @ w1 + b1)
    return jax.nn.sigmoid(h @ w2 + b2)


def reference_forward_bf16(x, w1, b1, w2, b2):
    # Same bf16-operand / f32-accumulate math as the kernel (final output kept f32).
    h = jnp.dot(x.astype(jnp.bfloat16), w1.astype(jnp.bfloat16),
                preferred_element_type=jnp.float32) + b1
    h = jax.nn.sigmoid(h)
    y = jnp.dot(h.astype(jnp.bfloat16), w2.astype(jnp.bfloat16),
                preferred_element_type=jnp.float32) + b2
    return jax.nn.sigmoid(y)


if __name__ == "__main__":
    key = jax.random.PRNGKey(0)
    kx, k1, kb1, k2, kb2 = jax.random.split(key, 5)

    batch = 8
    x = jax.random.normal(kx, (batch, IN_DIM), dtype=jnp.float32)

    # Deterministic parameter init (uniform, akin to PyTorch's default Linear init).
    bound1 = 1.0 / (IN_DIM ** 0.5)
    w1 = jax.random.uniform(k1, (IN_DIM, HID_DIM), jnp.float32, -bound1, bound1)
    b1 = jax.random.uniform(kb1, (1, HID_DIM), jnp.float32, -bound1, bound1)
    bound2 = 1.0 / (HID_DIM ** 0.5)
    w2 = jax.random.uniform(k2, (HID_DIM, OUT_DIM), jnp.float32, -bound2, bound2)
    b2 = jax.random.uniform(kb2, (1, OUT_DIM), jnp.float32, -bound2, bound2)

    params = prepare_params(w1, b1, w2, b2)   # one-time, hoisted out of the forward path

    out = net_forward(x, params)
    jax.block_until_ready(out)
    assert out.shape == (batch, OUT_DIM)

    # Check against a bf16-matched reference (loose only by the final bf16 store) ...
    ref_bf16 = reference_forward_bf16(x, w1, b1, w2, b2)
    assert jnp.allclose(out, ref_bf16, atol=1e-2, rtol=1e-2)
    # ... and sanity check against the full-f32 reference (bf16 cast tolerance).
    ref_f32 = reference_forward_f32(x, w1, b1, w2, b2)
    assert jnp.allclose(out, ref_f32, atol=2e-2, rtol=2e-2)

    # Exercise a larger, non-tile-multiple batch too (multi-step "parallel" grid).
    xl = jax.random.normal(kx, (520, IN_DIM), dtype=jnp.float32)
    out_l = net_forward(xl, params)
    jax.block_until_ready(out_l)
    assert out_l.shape == (520, OUT_DIM)
    assert jnp.allclose(out_l, reference_forward_f32(xl, w1, b1, w2, b2),
                        atol=2e-2, rtol=2e-2)

    print("KERNEL_OK")
</pallas_src>

<mosaic_0001>
module attributes {stable_mosaic.version = 11 : i64} {
  func.func @_mlp_kernel(%arg0: i32, %arg1: memref<16x400xf32, #tpu.memory_space<vmem>>, %arg2: memref<400x128xbf16, #tpu.memory_space<vmem>>, %arg3: memref<1x128xf32, #tpu.memory_space<vmem>>, %arg4: memref<128x128xbf16, #tpu.memory_space<vmem>>, %arg5: memref<1x128xf32, #tpu.memory_space<vmem>>, %arg6: memref<16x128xbf16, #tpu.memory_space<vmem>>) attributes {dimension_semantics = [#tpu.dimension_semantics<parallel>], iteration_bounds = array<i64: 1>, scalar_prefetch = 0 : i64, scratch_operands = 0 : i64, tpu.core_type = #tpu.core_type<tc>, window_params = [{transform_indices = @transform_0, window_bounds = array<i64: 16, 400>}, {pipeline_mode = #tpu.pipeline_mode<synchronous>, transform_indices = @transform_1, window_bounds = array<i64: 400, 128>}, {pipeline_mode = #tpu.pipeline_mode<synchronous>, transform_indices = @transform_2, window_bounds = array<i64: 1, 128>}, {pipeline_mode = #tpu.pipeline_mode<synchronous>, transform_indices = @transform_3, window_bounds = array<i64: 128, 128>}, {pipeline_mode = #tpu.pipeline_mode<synchronous>, transform_indices = @transform_4, window_bounds = array<i64: 1, 128>}, {transform_indices = @transform_5, window_bounds = array<i64: 16, 128>}]} {
    %c0 = arith.constant 0 : index
    %c0_0 = arith.constant 0 : index
    %0 = vector.load %arg1[%c0, %c0_0] : memref<16x400xf32, #tpu.memory_space<vmem>>, vector<16x400xf32>
    %1 = arith.truncf %0 : vector<16x400xf32> to vector<16x400xbf16>
    %c0_1 = arith.constant 0 : index
    %c0_2 = arith.constant 0 : index
    %2 = vector.load %arg2[%c0_1, %c0_2] : memref<400x128xbf16, #tpu.memory_space<vmem>>, vector<400x128xbf16>
    %cst = arith.constant dense<0.000000e+00> : vector<16x128xf32>
    %3 = tpu.matmul %1, %2, %cst {dimension_numbers = #tpu.dot_dimension_numbers<[1], [0], [0], [1], [0, 0, 1, 1], [], []>} : vector<16x400xbf16>, vector<400x128xbf16>, vector<16x128xf32> -> vector<16x128xf32>
    %c0_3 = arith.constant 0 : index
    %c0_4 = arith.constant 0 : index
    %4 = vector.load %arg3[%c0_3, %c0_4] : memref<1x128xf32, #tpu.memory_space<vmem>>, vector<1x128xf32>
    %5 = vector.broadcast %4 : vector<1x128xf32> to vector<16x128xf32>
    %6 = arith.addf %3, %5 : vector<16x128xf32>
    %7 = arith.negf %6 : vector<16x128xf32>
    %8 = math.exp %7 : vector<16x128xf32>
    %cst_5 = arith.constant 1.000000e+00 : f32
    %9 = vector.broadcast %cst_5 : f32 to vector<16x128xf32>
    %10 = arith.addf %9, %8 : vector<16x128xf32>
    %11 = arith.divf %9, %10 : vector<16x128xf32>
    %12 = arith.truncf %11 : vector<16x128xf32> to vector<16x128xbf16>
    %c0_6 = arith.constant 0 : index
    %c0_7 = arith.constant 0 : index
    %13 = vector.load %arg4[%c0_6, %c0_7] : memref<128x128xbf16, #tpu.memory_space<vmem>>, vector<128x128xbf16>
    %cst_8 = arith.constant dense<0.000000e+00> : vector<16x128xf32>
    %14 = tpu.matmul %12, %13, %cst_8 {dimension_numbers = #tpu.dot_dimension_numbers<[1], [0], [0], [1], [0, 0, 1, 1], [], []>} : vector<16x128xbf16>, vector<128x128xbf16>, vector<16x128xf32> -> vector<16x128xf32>
    %c0_9 = arith.constant 0 : index
    %c0_10 = arith.constant 0 : index
    %15 = vector.load %arg5[%c0_9, %c0_10] : memref<1x128xf32, #tpu.memory_space<vmem>>, vector<1x128xf32>
    %16 = vector.broadcast %15 : vector<1x128xf32> to vector<16x128xf32>
    %17 = arith.addf %14, %16 : vector<16x128xf32>
    %18 = arith.negf %17 : vector<16x128xf32>
    %19 = math.exp %18 : vector<16x128xf32>
    %cst_11 = arith.constant 1.000000e+00 : f32
    %20 = vector.broadcast %cst_11 : f32 to vector<16x128xf32>
    %21 = arith.addf %20, %19 : vector<16x128xf32>
    %22 = arith.divf %20, %21 : vector<16x128xf32>
    %23 = arith.truncf %22 : vector<16x128xf32> to vector<16x128xbf16>
    %c0_12 = arith.constant 0 : index
    %c0_13 = arith.constant 0 : index
    %24 = vector.load %arg6[%c0_12, %c0_13] : memref<16x128xbf16, #tpu.memory_space<vmem>>, vector<16x128xbf16>
    tpu.vector_store %arg6[%c0_12, %c0_13], %23 {strides = array<i32>} : memref<16x128xbf16, #tpu.memory_space<vmem>>, vector<16x128xbf16>,
    return
  }
  func.func @transform_0(%arg0: i32) -> (i32, i32) {
    %c0_i32 = arith.constant 0 : i32
    %c0_i32_0 = arith.constant 0 : i32
    return %arg0, %c0_i32 : i32, i32
  }
  func.func @transform_1(%arg0: i32) -> (i32, i32) {
    %c0_i32 = arith.constant 0 : i32
    %c0_i32_0 = arith.constant 0 : i32
    %c0_i32_1 = arith.constant 0 : i32
    return %c0_i32, %c0_i32_0 : i32, i32
  }
  func.func @transform_2(%arg0: i32) -> (i32, i32) {
    %c0_i32 = arith.constant 0 : i32
    %c0_i32_0 = arith.constant 0 : i32
    %c0_i32_1 = arith.constant 0 : i32
    return %c0_i32, %c0_i32_0 : i32, i32
  }
  func.func @transform_3(%arg0: i32) -> (i32, i32) {
    %c0_i32 = arith.constant 0 : i32
    %c0_i32_0 = arith.constant 0 : i32
    %c0_i32_1 = arith.constant 0 : i32
    return %c0_i32, %c0_i32_0 : i32, i32
  }
  func.func @transform_4(%arg0: i32) -> (i32, i32) {
    %c0_i32 = arith.constant 0 : i32
    %c0_i32_0 = arith.constant 0 : i32
    %c0_i32_1 = arith.constant 0 : i32
    return %c0_i32, %c0_i32_0 : i32, i32
  }
  func.func @transform_5(%arg0: i32) -> (i32, i32) {
    %c0_i32 = arith.constant 0 : i32
    %c0_i32_0 = arith.constant 0 : i32
    return %arg0, %c0_i32 : i32, i32
  }
}

</mosaic_0001>

<bundles_post_ra>
// kernel: tpu_custom_call.1
= control target key start
LH: loop header
LB: loop body
LE: loop exit
PB: predicated region body
PF: predicated region fallthrough
CT: control target
= control target key end

     0   :  { %10 = vsyncpa [#allocation3], 0  ;;  %s896_s0 = inlined_call_operand.hbm [shape: f32[16,400], index: 0, kind: input, shape index: {}]   ;;  %s897_s1 = inlined_call_operand.hbm [shape: bf16[400,128], index: 1, kind: input, shape index: {}]   ;;  %s898_s2 = inlined_call_operand.vmem [shape: f32[1,128], index: 2, kind: input, shape index: {}]   ;;  %s899_s3 = inlined_call_operand.hbm [shape: bf16[128,128], index: 3, kind: input, shape index: {}]   ;;  %s900_s4 = inlined_call_operand.vmem [shape: f32[1,128], index: 4, kind: input, shape index: {}]   ;;  %s901_s5 = inlined_call_operand.hbm [shape: bf16[16,128], index: 5, kind: output, shape index: {}]  }
   0x1   :  { %11 = vsyncpa [#allocation6], 0  ;;  %s30_s20 = sshll.u32 %s897_s1, 4  ;;  %s31_s20 = int_to_ptr.hbm [resolvable:$true] %s30_s20 }
   0x2   :  { %12 = vsyncpa [#allocation4], 0  ;;  %s831_s21 = smov [#allocation5]   ;;  %s17_s25 = sshll.u32 %s896_s0, 4  ;;  %s18_s25 = int_to_ptr.hbm [resolvable:$true] %s17_s25 }
   0x3   :  { %s32_s22 = sshll.u32 %s831_s21, 4  ;;  %s832_s26 = smov 64   ;;  %s33_s22 = int_to_ptr.vmem [resolvable:$true] %s32_s22 }
   0x4   :  { %s833_s27 = smov 4   ;;  %s834_s28 = smov [#allocation2]  }
   0x5   :  { %38 = dma.hbm_to_vmem [thread:$0]  %s31_s20, 3200, %s33_s22, [#allocation6], %s832_s26, %s832_s26, %s833_s27  }
   0x6   :  { %s19_s29 = sshll.u32 %s834_s28, 4  ;;  %s835_s1 = smov 512   ;;  %s20_s29 = int_to_ptr.vmem [resolvable:$true] %s19_s29 }
   0x7   :  { %s836_s30 = smov 32   ;;  %s45_s8 = sshll.u32 %s899_s3, 4  ;;  %s46_s8 = int_to_ptr.hbm [resolvable:$true] %s45_s8 }
   0x8   :  { %25 = dma.hbm_to_vmem [thread:$0]  %s18_s25, 1024, %s20_s29, [#allocation3], %s835_s1, %s835_s1, %s836_s30  }
   0x9   :  { %s837_s9 = smov [#allocation7]  }
   0xa   :  { %s47_s0 = sshll.u32 %s837_s9, 4  ;;  %s48_s0 = int_to_ptr.vmem [resolvable:$true] %s47_s0 }
   0xb   :  { %53 = dma.hbm_to_vmem [thread:$0]  %s46_s8, 1024, %s48_s0, [#allocation6], %s832_s26, %s832_s26, %s833_s27  }
   0xc   :  { %825 = dma.done.wait [#allocation3], 1024  }
   0xd   :  { %826 = vsyncadd [#allocation3], 4294966272 }
   0xe   :  { %827 = dma.done.wait [#allocation6], 4224  }
   0xf   :  { %828 = vsyncadd [#allocation6], 4294963072  ;;  %v672_v0 = vld [vmem:[#allocation5 + $0x38] sm:$0xff]  ;;  %v671_v3 = vld [vmem:[#allocation5 + $0x30] sm:$0xff]  ;;  %vm285_vm0 = vcmask 130048   ;;  %s514_s15 = sshll.u32 %s901_s5, 4  ;;  %s515_s15 = int_to_ptr.hbm [resolvable:$true] %s514_s15 }
  0x10   :  { %v680_v1 = vld [vmem:[#allocation5 + $0x78] sm:$0xff]  ;;  %289 = vmatpush.bf16.msra.mxu0 %v672_v0  ;;  %v679_v4 = vld [vmem:[#allocation5 + $0x70] sm:$0xff]  ;;  %v670_v6 = vld [vmem:[#allocation5 + $0x28] sm:$0xff] }
  0x11   :  { %v688_v2 = vld [vmem:[#allocation5 + $0xb8] sm:$0xff]  ;;  %303 = vmatpush.bf16.msra.mxu1 %v680_v1  ;;  %v687_v5 = vld [vmem:[#allocation5 + $0xb0] sm:$0xff]  ;;  %v678_v7 = vld [vmem:[#allocation5 + $0x68] sm:$0xff] }
  0x12   :  { %317 = vmatpush.bf16.msra.mxu2 %v688_v2  ;;  %v689_v8 = vld [vmem:[#allocation5 + $0xc0] sm:$0xff]  ;;  %v686_v9 = vld [vmem:[#allocation5 + $0xa8] sm:$0xff]  ;;  %v72_v10 = vld [vmem:[#allocation2 + $0x18] sm:$0xff] }
  0x13   :  { %v76_v11 = vld [vmem:[#allocation2 + $0x38] sm:$0xff]  ;;  %338 = vmatpush.bf16.msra.mxu3 %v689_v8  ;;  %v669_v13 = vld [vmem:[#allocation5 + $0x20] sm:$0xff]  ;;  %v667_v19 = vld [vmem:[#allocation5 + $0x10] sm:$0xff] }
  0x14   :  { %290 = vmatpush.bf16.msra.mxu0 %v671_v3  ;;  %v80_v12 = vpack.c.bf16 %v76_v11, %v72_v10  ;;  %v677_v14 = vld [vmem:[#allocation5 + $0x60] sm:$0xff]  ;;  %v668_v16 = vld [vmem:[#allocation5 + $0x18] sm:$0xff]  ;;  %v675_v20 = vld [vmem:[#allocation5 + $0x50] sm:$0xff] }
  0x15   :  { %304 = vmatpush.bf16.msra.mxu1 %v679_v4  ;;  %v685_v15 = vld [vmem:[#allocation5 + $0xa0] sm:$0xff]  ;;  %v676_v17 = vld [vmem:[#allocation5 + $0x58] sm:$0xff]  ;;  %v683_v21 = vld [vmem:[#allocation5 + $0x90] sm:$0xff] }
  0x16   :  { %318 = vmatpush.bf16.msra.mxu2 %v687_v5  ;;  %628 = vmatmul.msk.bf16.vlgmr.msra.gmra.mxu3 %vm285_vm0, %v80_v12  ;;  %v684_v18 = vld [vmem:[#allocation5 + $0x98] sm:$0xff]  ;;  %v666_v22 = vld [vmem:[#allocation5 + $0x8] sm:$0xff]  ;;  %v665_v25 = vld [vmem:[#allocation5] sm:$0xff] }
  0x17   :  { %v674_v23 = vld [vmem:[#allocation5 + $0x48] sm:$0xff]  ;;  %v673_v26 = vld [vmem:[#allocation5 + $0x40] sm:$0xff]  ;;  %v71_v32 = vld [vmem:[#allocation2 + $0x10] sm:$0xff] }
  0x18   :  { %291 = vmatpush.bf16.msra.mxu0 %v670_v6  ;;  %v682_v24 = vld [vmem:[#allocation5 + $0x88] sm:$0xff]  ;;  %v69_v27 = vld [vmem:[#allocation2] sm:$0xff]  ;;  %v75_v33 = vld [vmem:[#allocation2 + $0x30] sm:$0xff] }
  0x19   :  { %305 = vmatpush.bf16.msra.mxu1 %v678_v7  ;;  %v73_v28 = vld [vmem:[#allocation2 + $0x20] sm:$0xff]  ;;  %v70_v29 = vld [vmem:[#allocation2 + $0x8] sm:$0xff]  ;;  %v79_v36 = vpack.c.bf16 %v75_v33, %v71_v32  ;;  %v696_v38 = vld [vmem:[#allocation7 + $0x30] sm:$0xff] }
  0x1a   :  { %319 = vmatpush.bf16.msra.mxu2 %v686_v9  ;;  %v74_v30 = vld [vmem:[#allocation2 + $0x28] sm:$0xff]  ;;  %v681_v31 = vld [vmem:[#allocation5 + $0x80] sm:$0xff]  ;;  %v77_v34 = vpack.c.bf16 %v73_v28, %v69_v27  ;;  %v695_v39 = vld [vmem:[#allocation7 + $0x28] sm:$0xff] }
  0x1b   :  { %v78_v35 = vpack.c.bf16 %v74_v30, %v70_v29  ;;  %v697_v37 = vld [vmem:[#allocation7 + $0x38] sm:$0xff]  ;;  %v694_v41 = vld [vmem:[#allocation7 + $0x20] sm:$0xff]  ;;  %v692_v46 = vld [vmem:[#allocation7 + $0x10] sm:$0xff] }
  0x1c   :  { %292 = vmatpush.bf16.msra.mxu0 %v669_v13  ;;  %452 = vmatpush.bf16.msrb.mxu3 %v697_v37  ;;  %v711_v40 = vld [vmem:[%s898_s2] ss:$0 sm:$0xff]  ;;  %v691_v50 = vld [vmem:[#allocation7 + $0x8] sm:$0xff]  ;;  %v690_v55 = vld [vmem:[#allocation7] sm:$0xff] }
  0x1d   :  { %306 = vmatpush.bf16.msra.mxu1 %v677_v14  ;;  %v693_v42 = vld [vmem:[#allocation7 + $0x18] sm:$0xff] }
  0x1e   :  { %320 = vmatpush.bf16.msra.mxu2 %v685_v15 }
  0x20   :  { %293 = vmatpush.bf16.msra.mxu0 %v668_v16  ;;  %453 = vmatpush.bf16.msrb.mxu3 %v696_v38 }
  0x21   :  { %307 = vmatpush.bf16.msra.mxu1 %v676_v17 }
  0x22   :  { %321 = vmatpush.bf16.msra.mxu2 %v684_v18 }
  0x24   :  { %294 = vmatpush.bf16.msra.mxu0 %v667_v19  ;;  %454 = vmatpush.bf16.msrb.mxu3 %v695_v39 }
  0x25   :  { %308 = vmatpush.bf16.msra.mxu1 %v675_v20 }
  0x26   :  { %322 = vmatpush.bf16.msra.mxu2 %v683_v21 }
  0x28   :  { %295 = vmatpush.bf16.msra.mxu0 %v666_v22  ;;  %455 = vmatpush.bf16.msrb.mxu3 %v694_v41 }
  0x29   :  { %309 = vmatpush.bf16.msra.mxu1 %v674_v23 }
  0x2a   :  { %323 = vmatpush.bf16.msra.mxu2 %v682_v24 }
  0x2c   :  { %296 = vmatpush.bf16.msra.mxu0 %v665_v25  ;;  %456 = vmatpush.bf16.msrb.mxu3 %v693_v42  ;;  %v712_v25 = vld [vmem:[%s900_s4] ss:$0 sm:$0xff]  ;;  %s838_s4 = smov [#allocation8]  }
  0x2d   :  { %310 = vmatpush.bf16.msra.mxu1 %v673_v26  ;;  %s512_s12 = sshll.u32 %s838_s4, 4  ;;  %s513_s12 = int_to_ptr.vmem [resolvable:$true] %s512_s12 }
  0x2e   :  { %324 = vmatpush.bf16.msra.mxu2 %v681_v31 }
  0x2f   :  { %297 = vmatmul.bf16.vlgmr.msra.gmra.mxu0 %v77_v34 }
  0x30   :  { %311 = vmatmul.bf16.vlgmr.msra.gmra.mxu1 %v78_v35  ;;  %457 = vmatpush.bf16.msrb.mxu3 %v692_v46 }
  0x31   :  { %325 = vmatmul.bf16.vlgmr.msra.gmra.mxu2 %v79_v36 }
  0x34   :  { %458 = vmatpush.bf16.msrb.mxu3 %v691_v50 }
  0x38   :  { %459 = vmatpush.bf16.msrb.mxu3 %v690_v55 }
  0x99   :  { %v340_v48 = vpop.f32.mrf.mxu3 }
  0xa1   :  { %v342_v61 = vpop.f32.mrf.mxu3 }
  0xac   :  { %v298_v43 = vpop.f32.mrf.mxu0 }
  0xad   :  { %v299_v44 = vadd.f32 %v711_v40, %v298_v43  ;;  %v312_v45 = vpop.f32.mrf.mxu1 }
  0xaf   :  { %v313_v47 = vadd.f32 %v312_v45, %v299_v44 }
  0xb4   :  { %v326_v49 = vpop.f32.mrf.mxu2  ;;  %v300_v52 = vpop.f32.mrf.mxu0 }
  0xb5   :  { %v327_v51 = vadd.f32 %v326_v49, %v313_v47  ;;  %v301_v54 = vadd.f32 %v711_v40, %v300_v52  ;;  %v314_v57 = vpop.f32.mrf.mxu1 }
  0xb7   :  { %v341_v53 = vadd.f32 %v340_v48, %v327_v51  ;;  %v315_v58 = vadd.f32 %v314_v57, %v301_v54 }
  0xb9   :  { %v629_v56 = vmul.f32 -1.442695, %v341_v53 }
  0xbb   :  { %713 = vpow2.f32 %v629_v56 }
  0xbc   :  { %v328_v59 = vpop.f32.mrf.mxu2 }
  0xbd   :  { %v329_v60 = vadd.f32 %v328_v59, %v315_v58 }
  0xbf   :  { %v343_v62 = vadd.f32 %v342_v61, %v329_v60 }
  0xc1   :  { %v714_v63 = vpop.eup %713  ;;  %v630_v0 = vmul.f32 -1.442695, %v343_v62 }
  0xc2   :  { %v351_v1 = vadd.f32 1.0, %v714_v63 }
  0xc3   :  { %715 = vpow2.f32 %v630_v0 }
  0xc4   :  { %717 = vrcp.f32 %v351_v1  ;;  %vm358_vm2 = vweird.f32 %v351_v1  ;;  %v364_v12 = vand.u32 2147483648, %v351_v1  ;;  %v362_v14 = vand.u32 2147483647, %v351_v1 }
  0xc6   :  { %v365_v19 = vor.u32 1.1754944e-38, %v364_v12  ;;  %vm363_vm7 = vcmp.eq.f32.partialorder %v362_v14, 8.507059e+37 }
  0xc9   :  { %v716_v2 = vpop.eup %715 }
  0xca   :  { %v718_v3 = vpop.eup %717  ;;  %v352_v4 = vadd.f32 1.0, %v716_v2 }
  0xcb   :  { %v354_v5 = vmul.f32 %v718_v3, %v351_v1  ;;  %vm359_vm1 = vweird.f32 %v718_v3 }
  0xcc   :  { %719 = vrcp.f32 %v352_v4  ;;  %v379_v13 = vand.u32 2147483648, %v352_v4  ;;  %v377_v16 = vand.u32 2147483647, %v352_v4  ;;  %vm360_vm4 = vmor %vm358_vm2, %vm359_vm1  ;;  %vm373_vm5 = vweird.f32 %v352_v4 }
  0xcd   :  { %v355_v6 = vsub.f32 1.0, %v354_v5 }
  0xce   :  { %v380_v20 = vor.u32 1.1754944e-38, %v379_v13  ;;  %vm378_vm8 = vcmp.eq.f32.partialorder %v377_v16, 8.507059e+37 }
  0xcf   :  { %v356_v7 = vmul.f32 %v718_v3, %v355_v6 }
  0xd1   :  { %v357_v10 = vadd.f32 %v718_v3, %v356_v7 }
  0xd2   :  { %v720_v8 = vpop.eup %719 }
  0xd3   :  { %v369_v9 = vmul.f32 %v720_v8, %v352_v4  ;;  %vm374_vm3 = vweird.f32 %v720_v8  ;;  %v361_v17 = vsel %vm360_vm4, %v718_v3, %v357_v10 }
  0xd4   :  { %vm375_vm6 = vmor %vm373_vm5, %vm374_vm3  ;;  %v366_v22 = vsel %vm363_vm7, %v365_v19, %v361_v17 }
  0xd5   :  { %v370_v11 = vsub.f32 1.0, %v369_v9 }
  0xd7   :  { %v371_v15 = vmul.f32 %v720_v8, %v370_v11 }
  0xd9   :  { %v372_v18 = vadd.f32 %v720_v8, %v371_v15 }
  0xdb   :  { %v376_v21 = vsel %vm375_vm6, %v720_v8, %v372_v18 }
  0xdc   :  { %v381_v23 = vsel %vm378_vm8, %v380_v20, %v376_v21 }
  0xdd   :  { %v383_v24 = vpack.c.bf16 %v381_v23, %v366_v22 }
  0xdf   :  { %460 = vmatmul.bf16.vlgmr.msrb.gmra.mxu3 %v383_v24 }
 0x162   :  { %v461_v26 = vpop.f32.mrf.mxu3 }
 0x163   :  { %v462_v27 = vadd.f32 %v712_v25, %v461_v26 }
 0x165   :  { %v663_v28 = vmul.f32 -1.442695, %v462_v27 }
 0x167   :  { %721 = vpow2.f32 %v663_v28 }
 0x16a   :  { %v463_v29 = vpop.f32.mrf.mxu3 }
 0x16b   :  { %v464_v30 = vadd.f32 %v712_v25, %v463_v29 }
 0x16d   :  { %v722_v31 = vpop.eup %721  ;;  %v664_v32 = vmul.f32 -1.442695, %v464_v30 }
 0x16e   :  { %v472_v33 = vadd.f32 1.0, %v722_v31 }
 0x16f   :  { %723 = vpow2.f32 %v664_v32 }
 0x170   :  { %725 = vrcp.f32 %v472_v33  ;;  %vm479_vm10 = vweird.f32 %v472_v33  ;;  %v485_v44 = vand.u32 2147483648, %v472_v33  ;;  %v483_v46 = vand.u32 2147483647, %v472_v33 }
 0x172   :  { %v486_v51 = vor.u32 1.1754944e-38, %v485_v44  ;;  %vm484_vm15 = vcmp.eq.f32.partialorder %v483_v46, 8.507059e+37 }
 0x175   :  { %v724_v34 = vpop.eup %723 }
 0x176   :  { %v726_v35 = vpop.eup %725  ;;  %v473_v36 = vadd.f32 1.0, %v724_v34 }
 0x177   :  { %v475_v37 = vmul.f32 %v726_v35, %v472_v33  ;;  %vm480_vm9 = vweird.f32 %v726_v35 }
 0x178   :  { %727 = vrcp.f32 %v473_v36  ;;  %v500_v45 = vand.u32 2147483648, %v473_v36  ;;  %v498_v48 = vand.u32 2147483647, %v473_v36  ;;  %vm481_vm12 = vmor %vm479_vm10, %vm480_vm9  ;;  %vm494_vm13 = vweird.f32 %v473_v36 }
 0x179   :  { %v476_v38 = vsub.f32 1.0, %v475_v37 }
 0x17a   :  { %v501_v52 = vor.u32 1.1754944e-38, %v500_v45  ;;  %vm499_vm0 = vcmp.eq.f32.partialorder %v498_v48, 8.507059e+37 }
 0x17b   :  { %v477_v39 = vmul.f32 %v726_v35, %v476_v38 }
 0x17d   :  { %v478_v43 = vadd.f32 %v726_v35, %v477_v39 }
 0x17e   :  { %v728_v40 = vpop.eup %727 }
 0x17f   :  { %v490_v41 = vmul.f32 %v728_v40, %v473_v36  ;;  %vm495_vm11 = vweird.f32 %v728_v40  ;;  %v482_v49 = vsel %vm481_vm12, %v726_v35, %v478_v43 }
 0x180   :  { %vm496_vm14 = vmor %vm494_vm13, %vm495_vm11  ;;  %v487_v54 = vsel %vm484_vm15, %v486_v51, %v482_v49 }
 0x181   :  { %v491_v42 = vsub.f32 1.0, %v490_v41 }
 0x183   :  { %v492_v47 = vmul.f32 %v728_v40, %v491_v42 }
 0x185   :  { %v493_v50 = vadd.f32 %v728_v40, %v492_v47 }
 0x187   :  { %v497_v53 = vsel %vm496_vm14, %v728_v40, %v493_v50 }
 0x188   :  { %v502_v55 = vsel %vm499_vm0, %v501_v52, %v497_v53 }
 0x189   :  { %v701_v56 = vpack.c.bf16 %v502_v55, %v487_v54 }
 0x18b   :  { %702 = vst [vmem:[#allocation8] sm:$0xff] %v701_v56  }
 0x18c   :  { %520 = dma.vmem_to_hbm [thread:$0]  %s513_s12, 128, %s515_s15, [#allocation4], %s832_s26, %s832_s26, %s833_s27  }
 0x18d   :  { %829 = dma.done.wait [#allocation4], 128  }
 0x18e   :  { %830 = vsyncadd [#allocation4], 4294967168 }
 0x18f   :  { %525 = vsyncpa [#allocation3], 1 }
 0x190   :  { %526 = vsyncpa [#allocation6], 1 }
 0x191   :  { %527 = vsyncpa [#allocation4], 1 }

</bundles_post_ra>
